<compile_context>
chip_gen: v7x
topology: tpu7x:2x2x1
jax: 0.10.0
libtpu: 0.0.40
codegen_flags: <defaults>
</compile_context>

<pallas_src>
import jax
import jax.numpy as jnp
from jax.experimental import pallas as pl
from jax.experimental.pallas import tpu as pltpu

IN_F = 28 * 28     # 784
HID = 128
OUT = 10
OUT_PAD = 128      # lane-dense padded output width


def _round_up(x, m):
    return (x + m - 1) // m * m


def mlp_kernel(x_ref, w1_ref, b1_ref, w2_ref, b2_ref, o_ref):
    # fc1: x tile arrives as f32, cast to bf16 on the VPU, bf16 MXU matmul with
    # f32 accumulation; bias add + ReLU in f32.
    x_bf = x_ref[...].astype(jnp.bfloat16)
    h = jnp.dot(x_bf, w1_ref[...], preferred_element_type=jnp.float32)
    h = jnp.maximum(h + b1_ref[...], 0.0)
    # fc2: bf16 MXU matmul into a lane-dense 128-wide output slab, bf16 store.
    y = jnp.dot(h.astype(jnp.bfloat16), w2_ref[...],
                preferred_element_type=jnp.float32)
    o_ref[...] = (y + b2_ref[...]).astype(o_ref.dtype)


def mlp_forward(x, w1, b1, w2, b2, *, tm=2048):
    """x: (B, 1, 28, 28) or (B, 784) float32. Returns logits (B, 10) float32."""
    B = x.shape[0]
    x2d = x.reshape(B, -1)                    # nn.Flatten() (metadata-only)
    assert x2d.shape[1] == IN_F
    x2d = x2d.astype(jnp.float32)             # no-op for f32 inputs

    # Weights/biases are tiny; one-off wrapper-side cast/pad is negligible traffic.
    w1_bf = w1.astype(jnp.bfloat16)
    b1_f = b1.astype(jnp.float32).reshape(1, HID)
    w2_p = jnp.pad(w2.astype(jnp.bfloat16), ((0, 0), (0, OUT_PAD - OUT)))
    b2_p = jnp.pad(b2.astype(jnp.float32).reshape(1, OUT),
                   ((0, 0), (0, OUT_PAD - OUT)))

    # TM: multiple of 16 (bf16 output sublane packing), capped at ceil(B/2) so
    # the parallel batch grid has >= 2 tiles (keeps both v7x TCs busy).
    TM = max(16, min(tm, _round_up(-(-B // 2), 16)))
    grid = (pl.cdiv(B, TM),)

    flops = 2 * B * IN_F * HID + 2 * B * HID * OUT_PAD
    bytes_accessed = (x2d.size * 4 + w1_bf.size * 2 + w2_p.size * 2
                      + b1_f.size * 4 + b2_p.size * 4 + B * OUT_PAD * 2)

    out = pl.pallas_call(
        mlp_kernel,
        out_shape=jax.ShapeDtypeStruct((B, OUT_PAD), jnp.bfloat16),
        grid_spec=pltpu.PrefetchScalarGridSpec(
            num_scalar_prefetch=0,
            grid=grid,
            in_specs=[
                pl.BlockSpec((TM, IN_F), lambda i: (i, 0)),      # streamed f32 x tile
                pl.BlockSpec((IN_F, HID), lambda i: (0, 0)),     # resident w1 (bf16)
                pl.BlockSpec((1, HID), lambda i: (0, 0)),        # resident b1 (f32)
                pl.BlockSpec((HID, OUT_PAD), lambda i: (0, 0)),  # resident w2 (bf16, padded)
                pl.BlockSpec((1, OUT_PAD), lambda i: (0, 0)),    # resident b2 (f32, padded)
            ],
            out_specs=pl.BlockSpec((TM, OUT_PAD), lambda i: (i, 0)),
        ),
        compiler_params=pltpu.CompilerParams(
            dimension_semantics=("parallel",),
            vmem_limit_bytes=32 * 1024 * 1024),
        cost_estimate=pl.CostEstimate(
            flops=flops, transcendentals=0, bytes_accessed=bytes_accessed),
    )(x2d, w1_bf, b1_f, w2_p, b2_p)

    return out[:, :OUT].astype(jnp.float32)


def init_params(key):
    """Deterministic init mimicking PyTorch nn.Linear default:
    U(-1/sqrt(fan_in), 1/sqrt(fan_in)) for weights and biases.
    Weights stored as (in_features, out_features) so the kernel computes x @ W + b."""
    k1, k2, k3, k4 = jax.random.split(key, 4)
    bound1 = 1.0 / jnp.sqrt(IN_F)
    bound2 = 1.0 / jnp.sqrt(HID)
    w1 = jax.random.uniform(k1, (IN_F, HID), jnp.float32, -bound1, bound1)
    b1 = jax.random.uniform(k2, (1, HID), jnp.float32, -bound1, bound1)
    w2 = jax.random.uniform(k3, (HID, OUT), jnp.float32, -bound2, bound2)
    b2 = jax.random.uniform(k4, (1, OUT), jnp.float32, -bound2, bound2)
    return w1, b1, w2, b2


if __name__ == "__main__":
    key = jax.random.PRNGKey(0)
    kx, kp = jax.random.split(key)

    B = 64
    x = jax.random.normal(kx, (B, 1, 28, 28), dtype=jnp.float32)
    w1, b1, w2, b2 = init_params(kp)

    # tm=16 so the small test actually exercises a multi-step batch grid (4 tiles).
    logits = mlp_forward(x, w1, b1, w2, b2, tm=16)
    logits = jax.block_until_ready(logits)

    # Reference in plain JAX with matching bf16-input / f32-accumulate math.
    x2d = x.reshape(B, -1)
    xb = x2d.astype(jnp.bfloat16).astype(jnp.float32)
    w1b = w1.astype(jnp.bfloat16).astype(jnp.float32)
    w2b = w2.astype(jnp.bfloat16).astype(jnp.float32)
    h = jnp.maximum(xb @ w1b + b1, 0.0)
    ref = h.astype(jnp.bfloat16).astype(jnp.float32) @ w2b + b2

    assert logits.shape == (B, OUT)
    assert jnp.allclose(logits, ref, atol=3e-2, rtol=3e-2)

    print("KERNEL_OK")
</pallas_src>

<mosaic_0001>
module attributes {stable_mosaic.version = 11 : i64} {
  func.func @mlp_kernel(%arg0: i32, %arg1: memref<16x784xf32, #tpu.memory_space<vmem>>, %arg2: memref<784x128xbf16, #tpu.memory_space<vmem>>, %arg3: memref<1x128xf32, #tpu.memory_space<vmem>>, %arg4: memref<128x128xbf16, #tpu.memory_space<vmem>>, %arg5: memref<1x128xf32, #tpu.memory_space<vmem>>, %arg6: memref<16x128xbf16, #tpu.memory_space<vmem>>) attributes {dimension_semantics = [#tpu.dimension_semantics<parallel>], iteration_bounds = array<i64: 4>, scalar_prefetch = 0 : i64, scratch_operands = 0 : i64, tpu.core_type = #tpu.core_type<tc>, window_params = [{transform_indices = @transform_0, window_bounds = array<i64: 16, 784>}, {pipeline_mode = #tpu.pipeline_mode<synchronous>, transform_indices = @transform_1, window_bounds = array<i64: 784, 128>}, {pipeline_mode = #tpu.pipeline_mode<synchronous>, transform_indices = @transform_2, window_bounds = array<i64: 1, 128>}, {pipeline_mode = #tpu.pipeline_mode<synchronous>, transform_indices = @transform_3, window_bounds = array<i64: 128, 128>}, {pipeline_mode = #tpu.pipeline_mode<synchronous>, transform_indices = @transform_4, window_bounds = array<i64: 1, 128>}, {transform_indices = @transform_5, window_bounds = array<i64: 16, 128>}]} {
    %c0 = arith.constant 0 : index
    %c0_0 = arith.constant 0 : index
    %0 = vector.load %arg1[%c0, %c0_0] : memref<16x784xf32, #tpu.memory_space<vmem>>, vector<16x784xf32>
    %1 = arith.truncf %0 : vector<16x784xf32> to vector<16x784xbf16>
    %c0_1 = arith.constant 0 : index
    %c0_2 = arith.constant 0 : index
    %2 = vector.load %arg2[%c0_1, %c0_2] : memref<784x128xbf16, #tpu.memory_space<vmem>>, vector<784x128xbf16>
    %cst = arith.constant dense<0.000000e+00> : vector<16x128xf32>
    %3 = tpu.matmul %1, %2, %cst {dimension_numbers = #tpu.dot_dimension_numbers<[1], [0], [0], [1], [0, 0, 1, 1], [], []>} : vector<16x784xbf16>, vector<784x128xbf16>, vector<16x128xf32> -> vector<16x128xf32>
    %c0_3 = arith.constant 0 : index
    %c0_4 = arith.constant 0 : index
    %4 = vector.load %arg3[%c0_3, %c0_4] : memref<1x128xf32, #tpu.memory_space<vmem>>, vector<1x128xf32>
    %5 = vector.broadcast %4 : vector<1x128xf32> to vector<16x128xf32>
    %6 = arith.addf %3, %5 : vector<16x128xf32>
    %cst_5 = arith.constant 0.000000e+00 : f32
    %7 = vector.broadcast %cst_5 : f32 to vector<16x128xf32>
    %8 = arith.maximumf %6, %7 : vector<16x128xf32>
    %9 = arith.truncf %8 : vector<16x128xf32> to vector<16x128xbf16>
    %c0_6 = arith.constant 0 : index
    %c0_7 = arith.constant 0 : index
    %10 = vector.load %arg4[%c0_6, %c0_7] : memref<128x128xbf16, #tpu.memory_space<vmem>>, vector<128x128xbf16>
    %cst_8 = arith.constant dense<0.000000e+00> : vector<16x128xf32>
    %11 = tpu.matmul %9, %10, %cst_8 {dimension_numbers = #tpu.dot_dimension_numbers<[1], [0], [0], [1], [0, 0, 1, 1], [], []>} : vector<16x128xbf16>, vector<128x128xbf16>, vector<16x128xf32> -> vector<16x128xf32>
    %c0_9 = arith.constant 0 : index
    %c0_10 = arith.constant 0 : index
    %12 = vector.load %arg5[%c0_9, %c0_10] : memref<1x128xf32, #tpu.memory_space<vmem>>, vector<1x128xf32>
    %13 = vector.broadcast %12 : vector<1x128xf32> to vector<16x128xf32>
    %14 = arith.addf %11, %13 : vector<16x128xf32>
    %15 = arith.truncf %14 : vector<16x128xf32> to vector<16x128xbf16>
    %c0_11 = arith.constant 0 : index
    %c0_12 = arith.constant 0 : index
    %16 = vector.load %arg6[%c0_11, %c0_12] : memref<16x128xbf16, #tpu.memory_space<vmem>>, vector<16x128xbf16>
    tpu.vector_store %arg6[%c0_11, %c0_12], %15 {strides = array<i32>} : memref<16x128xbf16, #tpu.memory_space<vmem>>, vector<16x128xbf16>,
    return
  }
  func.func @transform_0(%arg0: i32) -> (i32, i32) {
    %c0_i32 = arith.constant 0 : i32
    %c0_i32_0 = arith.constant 0 : i32
    return %arg0, %c0_i32 : i32, i32
  }
  func.func @transform_1(%arg0: i32) -> (i32, i32) {
    %c0_i32 = arith.constant 0 : i32
    %c0_i32_0 = arith.constant 0 : i32
    %c0_i32_1 = arith.constant 0 : i32
    return %c0_i32, %c0_i32_0 : i32, i32
  }
  func.func @transform_2(%arg0: i32) -> (i32, i32) {
    %c0_i32 = arith.constant 0 : i32
    %c0_i32_0 = arith.constant 0 : i32
    %c0_i32_1 = arith.constant 0 : i32
    return %c0_i32, %c0_i32_0 : i32, i32
  }
  func.func @transform_3(%arg0: i32) -> (i32, i32) {
    %c0_i32 = arith.constant 0 : i32
    %c0_i32_0 = arith.constant 0 : i32
    %c0_i32_1 = arith.constant 0 : i32
    return %c0_i32, %c0_i32_0 : i32, i32
  }
  func.func @transform_4(%arg0: i32) -> (i32, i32) {
    %c0_i32 = arith.constant 0 : i32
    %c0_i32_0 = arith.constant 0 : i32
    %c0_i32_1 = arith.constant 0 : i32
    return %c0_i32, %c0_i32_0 : i32, i32
  }
  func.func @transform_5(%arg0: i32) -> (i32, i32) {
    %c0_i32 = arith.constant 0 : i32
    %c0_i32_0 = arith.constant 0 : i32
    return %arg0, %c0_i32 : i32, i32
  }
}

</mosaic_0001>

<bundles_post_ra>
// kernel: tpu_custom_call.1
= control target key start
LH: loop header
LB: loop body
LE: loop exit
PB: predicated region body
PF: predicated region fallthrough
CT: control target
= control target key end

     0   :  { %10 = vsyncpa [#allocation3], 0  ;;  %s1881_s0 = inlined_call_operand.hbm [shape: f32[64,784], index: 0, kind: input, shape index: {}]   ;;  %s1882_s1 = inlined_call_operand.hbm [shape: bf16[784,128], index: 1, kind: input, shape index: {}]   ;;  %s1883_s2 = inlined_call_operand.vmem [shape: f32[1,128], index: 2, kind: input, shape index: {}]   ;;  %s1884_s3 = inlined_call_operand.hbm [shape: bf16[128,128], index: 3, kind: input, shape index: {}]   ;;  %s1885_s4 = inlined_call_operand.vmem [shape: f32[1,128], index: 4, kind: input, shape index: {}]   ;;  %s1886_s5 = inlined_call_operand.hbm [shape: bf16[64,128], index: 5, kind: output, shape index: {}]  }
   0x1   :  { %12 = vsyncpa [#allocation3 + $0x1], 0 }
   0x2   :  { %13 = vsyncpa [#allocation6], 0 }
   0x3   :  { %14 = vsyncpa [#allocation4], 0 }
   0x4   :  { %16 = vsyncpa [#allocation4 + $0x1], 0  ;;  %s1620_s18 = smov 0   ;;  %s1622_s19 = smov 0  }
   0x5   :  { %s1624_s20 = smov 0   ;;  %s1626_s21 = smov 0  }
   0x6 LB: > { %s1641_s22 = sadd.s32 4294967295, %s1576_s21   ;;  %s1095_s23 = sadd.s32 4294967294, %s1576_s21   ;;  %s1576_s21 = sphi %s1626_s21, %s1905_s21   ;;  %s1572_s20 = sphi %s1624_s20, %s1904_s20   ;;  %s1568_s19 = sphi %s1622_s19, %s1903_s19   ;;  %s1564_s18 = sphi %s1620_s18, %s1902_s18  }
   0x7   : > { %p42_p0 = scmp.ne.s32.totalorder %s1568_s19, %s1564_s18  ;;  %p1887_p1 = scmp.eq.s32.totalorder %s1641_s22, 0 }
   0x8   : > { %p156_p3 = scmp.eq.s32.totalorder %s1095_s23, 3  ;;  %p1096_p5 = scmp.ge.s32.totalorder %s1576_s21, 1 }
   0x9   : > { %p1650_p4 = por %p1887_p1, %p42_p0  ;;  %p163_p7 = scmp.lt.s32.totalorder %s1576_s21, 5 }
   0xa   : > { %p1655_p6 = por %p156_p3, %p42_p0  ;;  %s1578_s27 = smov [#allocation5]  }
   0xb   : > { %s1890_s24 = scalar_select %p1650_p4, 1, 0 }
   0xc   : > { %s1891_s25 = scalar_select %p1655_p6, 1, 0 }
   0xd   : > { %p1660_p8 = pnand %p1096_p5, %p163_p7  ;;  %s175_s28 = sshll.u32 %s1578_s27, 4  ;;  %s176_s28 = int_to_ptr.vmem [resolvable:$true] %s175_s28 }
   0xe   : > { %s1579_s30 = smov [#allocation7]   ;;  %s1420_s9 = scalar_lea.hbm %s1882_s1, 6272 }
   0xf   : > { %s1892_s26 = scalar_select %p1660_p8, 1, 0 }
  0x10   : > { %p1300_p9 = pneg %p1660_p8  ;;  %s191_s6 = sshll.u32 %s1579_s30, 4  ;;  %s1672_s6 = int_to_ptr.vmem [resolvable:$true] %s191_s6 }
  0x11   : > { %p1421_p11 = scmp.ne.s32.totalorder %s1882_s1, %s1420_s9  ;;  %p1427_p3 = scmp.lt.u32.totalorder %s1420_s9, %s1882_s1 }
  0x12   : > { %p1668_p10 = pnand %p1300_p9, %p1887_p1 }
  0x14   : > { %p1422_p12 = pneg %p1668_p10 }
  0x16   : > { %p1423_p13 = pnand %p1422_p12, %p1421_p11 }
  0x18   : > { %p1424_p0 = pneg %p1423_p13 }
  0x1a   : > { %p1429_p5 = pnand %p1427_p3, %p1424_p0 }
  0x1c   : > { %1432 = shalt.err (!%p1429_p5)
}
  0x1d   : > { %s1433_s14 = scalar_lea.vmem %s176_s28, 6272  ;;  %p1441_p2 = scmp.lt.s32.totalorder %s176_s28, %s176_s28 }
  0x1e   : > { %p1434_p7 = scmp.ne.s32.totalorder %s176_s28, %s1433_s14  ;;  %p1442_p6 = scmp.lt.s32.totalorder %s1433_s14, %s1433_s14 }
  0x20   : > { %p1436_p9 = pnand %p1434_p7, %p1422_p12  ;;  %p1443_p4 = por %p1442_p6, %p1441_p2 }
  0x22   : > { %p1437_p1 = pneg %p1436_p9 }
  0x24   : > { %p1444_p8 = pnand %p1443_p4, %p1437_p1 }
  0x26   : > { %1447 = shalt.err (!%p1444_p8)
}
  0x27   : > { %s1580_s15 = smov 64   ;;  %s1581_s16 = smov 4  }
  0x28   : > { %1303 = dma.hbm_to_vmem [thread:$0]  (!%p1668_p10), %s1882_s1, 6272, %s176_s28, [#allocation6], %s1580_s15, %s1580_s15, %s1581_s16  }
  0x29   : > { %s1448_s7 = scalar_lea.hbm %s1884_s3, 1024 }
  0x2a   : > { %p1449_p11 = scmp.ne.s32.totalorder %s1884_s3, %s1448_s7  ;;  %p1455_p4 = scmp.lt.u32.totalorder %s1448_s7, %s1884_s3 }
  0x2c   : > { %p1451_p1 = pnand %p1449_p11, %p1422_p12 }
  0x2e   : > { %p1452_p2 = pneg %p1451_p1 }
  0x30   : > { %p1457_p6 = pnand %p1455_p4, %p1452_p2 }
  0x32   : > { %1460 = shalt.err (!%p1457_p6)
}
  0x33   : > { %s1461_s28 = scalar_lea.vmem %s1672_s6, 1024  ;;  %p1469_p3 = scmp.lt.s32.totalorder %s1672_s6, %s1672_s6 }
  0x34   : > { %p1462_p8 = scmp.ne.s32.totalorder %s1672_s6, %s1461_s28  ;;  %p1470_p5 = scmp.lt.s32.totalorder %s1461_s28, %s1461_s28 }
  0x36   : > { %p1464_p13 = pnand %p1462_p8, %p1422_p12  ;;  %p1471_p7 = por %p1470_p5, %p1469_p3 }
  0x38   : > { %p1465_p0 = pneg %p1464_p13 }
  0x3a   : > { %p1472_p9 = pnand %p1471_p7, %p1465_p0 }
  0x3c   : > { %1475 = shalt.err (!%p1472_p9)
}
  0x3d   : > { %1306 = dma.hbm_to_vmem [thread:$0]  (!%p1668_p10), %s1884_s3, 1024, %s1672_s6, [#allocation6], %s1580_s15, %s1580_s15, %s1581_s16  }
  0x3e   : > { %s1722_s14 = sadd.s32 1, %s1576_s21   ;;  %s29_s29 = sadd.s32 1, %s1572_s20 }
  0x3f   : > { %s26_s17 = ssub.s32 %s1576_s21, %s1722_s14  ;;  %p36_p12 = scmp.ne.s32.totalorder %s1572_s20, %s1568_s19 }
  0x40   : > { %p27_p11 = scmp.eq.s32.totalorder %s26_s17, 0  ;;  %p37_p1 = scmp.eq.s32.totalorder %s1576_s21, 0 }
  0x41   : > { %p1894_p2 = scmp.eq.s32.totalorder %s1641_s22, 3  ;;  %p1317_p6 = scmp.lt.s32.totalorder %s1576_s21, 4 }
  0x42   : > { %s1738_s27 = scalar_select %p27_p11, %s1572_s20, %s29_s29  }
  0x43   : > { %p1732_p4 = por %p1894_p2, %p36_p12  ;;  %p38_p8 = por %p37_p1, %p36_p12 }
  0x44   : > { %s208_s30 = sand.u32 1, %s1572_s20   ;;  %s1286_s6 = smul.u32 1792, %s1576_s21 }
  0x45   : > { %s1285_s7 = smul.u32 112, %s208_s30  ;;  %p1742_p10 = pnand %p1317_p6, %p38_p8 }
  0x46   : > { %s1749_s9 = scalar_lea.hbm %s1881_s0, %s1286_s6  ;;  %s1753_s28 = scalar_lea.sflag [#allocation3], %s208_s30 }
  0x47   : > { %s212_s10 = scalar_lea.vmem [#allocation2], %s1285_s7  ;;  %s1476_s12 = scalar_lea.hbm %s1749_s9, 1792 }
  0x48   : > { %s220_s11 = sshll.u32 %s212_s10, 4  ;;  %p1477_p13 = scmp.ne.s32.totalorder %s1749_s9, %s1476_s12  ;;  %s1751_s11 = int_to_ptr.vmem [resolvable:$true] %s220_s11 }
  0x49   : > { %p1478_p0 = pneg %p1742_p10  ;;  %s1481_s17 = scalar_lea.hbm %s1881_s0, 7168 }
  0x4a   : > { %p1482_p7 = scmp.lt.u32.totalorder %s1749_s9, %s1881_s0  ;;  %p1483_p9 = scmp.lt.u32.totalorder %s1481_s17, %s1476_s12 }
  0x4b   : > { %p1479_p3 = pnand %p1478_p0, %p1477_p13  ;;  %p1485_p11 = scmp.lt.u32.totalorder %s1476_s12, %s1749_s9 }
  0x4c   : > { %p1484_p12 = por %p1483_p9, %p1482_p7 }
  0x4d   : > { %p1480_p5 = pneg %p1479_p3 }
  0x4e   : > { %p1486_p1 = por %p1485_p11, %p1484_p12 }
  0x50   : > { %p1487_p2 = pnand %p1486_p1, %p1480_p5 }
  0x52   : > { %1490 = shalt.err (!%p1487_p2)
}
  0x53   : > { %s1491_s30 = scalar_lea.vmem %s1751_s11, 1792  ;;  %s1582_s7 = smov [#allocation2]  }
  0x54   : > { %p1492_p6 = scmp.ne.s32.totalorder %s1751_s11, %s1491_s30  ;;  %s1496_s8 = sshll.u32 %s1582_s7, 4  ;;  %s1497_s8 = int_to_ptr.vmem [resolvable:$false] %s1496_s8 }
  0x55   : > { %s1498_s10 = scalar_lea.vmem %s1497_s8, 3584  ;;  %p1499_p3 = scmp.lt.s32.totalorder %s1751_s11, %s1497_s8 }
  0x56   : > { %p1494_p8 = pnand %p1492_p6, %p1478_p0  ;;  %p1500_p7 = scmp.lt.s32.totalorder %s1498_s10, %s1491_s30 }
  0x58   : > { %p1495_p13 = pneg %p1494_p8  ;;  %p1501_p9 = por %p1500_p7, %p1499_p3 }
  0x5a   : > { %p1502_p12 = pnand %p1501_p9, %p1495_p13 }
  0x5c   : > { %1505 = shalt.err (!%p1502_p12)
}
  0x5d   : > { %s1583_s12 = smov 896   ;;  %s1584_s13 = smov 56  }
  0x5e   : > { %1310 = dma.hbm_to_vmem [thread:$0]  (!%p1742_p10), %s1749_s9, 1792, %s1751_s11, %s1753_s28, %s1583_s12, %s1583_s12, %s1584_s13  }
  0x5f   : > { %p1897_p0 = scmp.ne.s32.totalorder %s1892_s26, 0 }
  0x60   : > { %s1784_s29 = sand.u32 (!%p1897_p0), 1, %s1568_s19   ;;  %p1898_p5 = scmp.ne.s32.totalorder (!%p1897_p0), %s1890_s24, 0 }
  0x61   : > { %232 = sbr.rel (%p1897_p0) target bundleno = 631 (0x277), region = 40  ;;  %s235_s6 = scalar_lea.sflag (!%p1897_p0), [#allocation3], %s1784_s29 }
  0x62   : > { %s1287_s17 = smul.u32 (!%p1897_p0), 112, %s1784_s29 }
  0x64   : > { %s1788_s16 = scalar_lea.vmem (!%p1897_p0), [#allocation2], %s1287_s17 }
  0x68   : > { %1551 = dma.done.wait (%p1898_p5), %s235_s6, 1792  }
  0x69   : > { %1553 = vsyncadd (%p1898_p5), %s235_s6, 4294965504  ;;  %p1899_p10 = scmp.eq.s32.totalorder %s1641_s22, 0 }
  0x6b   : > { %1555 = dma.done.wait (%p1899_p10), [#allocation6], 7296   ;;  %p1900_p11 = pmov %p1899_p10 }
  0x6c   : > { %v1363_v0 = vld [vmem:[#allocation5 + $0x40] sm:$0xff]   ;;  %v1367_v4 = vld [vmem:[#allocation5 + $0x48] sm:$0xff]   ;;  %v1371_v8 = vld [vmem:[#allocation5 + $0x50] sm:$0xff]   ;;  %v1585_v43 = vmov 0.0   ;;  %vm1586_vm0 = vmmov 0   ;;  %vm696_vm1 = vcmask 130048  }
  0x6d   : > { %1557 = vsyncadd (%p1900_p11), [#allocation6], 4294960000  ;;  %v1364_v1 = vld [vmem:[#allocation5] sm:$0xff]   ;;  %1182 = vmatprep.subr.bf16.mxu0 %v1363_v0  ;;  %v1368_v5 = vld [vmem:[#allocation5 + $0x8] sm:$0xff]   ;;  %s1106_s15 = sshll.u32 %s1784_s29, 3  ;;  %s1176_s7 = sshll.u32 %s1641_s22, 7 }
  0x6e   : > { %v1365_v2 = vld [vmem:[#allocation5 + $0xc0] sm:$0xff]   ;;  %1183 = vmatpush3.bf16.msra.mxu0 %v1364_v1  ;;  %v1369_v6 = vld [vmem:[#allocation5 + $0xc8] sm:$0xff]   ;;  %v1372_v9 = vld [vmem:[#allocation5 + $0x10] sm:$0xff]   ;;  %s272_s28 = scalar_lea.vmem [#allocation8], %s1106_s15  ;;  %s1838_s12 = scalar_lea.hbm %s1886_s5, %s1176_s7 }
  0x6f   : > { %v1366_v3 = vld [vmem:[#allocation5 + $0x80] sm:$0xff]   ;;  %1204 = vmatprep.subr.bf16.mxu1 %v1365_v2  ;;  %1184 = vmatprep.subr.bf16.mxu0 %v1367_v4  ;;  %v1370_v7 = vld [vmem:[#allocation5 + $0x88] sm:$0xff]   ;;  %v1373_v10 = vld [vmem:[#allocation5 + $0xd0] sm:$0xff]   ;;  %s1003_s30 = sshll.u32 %s272_s28, 4  ;;  %s990_s13 = scalar_lea.sflag [#allocation4], %s1784_s29  ;;  %s1833_s30 = int_to_ptr.vmem [resolvable:$true] %s1003_s30 }
  0x70   : > { %1205 = vmatpush3.bf16.msra.mxu1 %v1366_v3  ;;  %v1374_v11 = vld [vmem:[#allocation5 + $0x90] sm:$0xff]   ;;  %v1375_v12 = vld [vmem:[#allocation5 + $0x58] sm:$0xff]   ;;  %v1379_v16 = vld [vmem:[#allocation5 + $0x60] sm:$0xff]   ;;  %s1506_s17 = scalar_lea.vmem %s1833_s30, 128  ;;  %s1587_s22 = smov [#allocation8]  }
  0x71   : > { %1206 = vmatprep.subr.bf16.mxu1 %v1369_v6  ;;  %v1376_v13 = vld [vmem:[#allocation5 + $0x18] sm:$0xff]   ;;  %v1380_v17 = vld [vmem:[#allocation5 + $0x20] sm:$0xff]   ;;  %v1383_v20 = vld [vmem:[#allocation5 + $0x68] sm:$0xff]   ;;  %p1507_p1 = scmp.ne.s32.totalorder %s1833_s30, %s1506_s17  ;;  %s1510_s6 = sshll.u32 %s1587_s22, 4  ;;  %s1511_s6 = int_to_ptr.vmem [resolvable:$false] %s1510_s6 }
  0x72   : > { %1185 = vmatpush3.bf16.msra.mxu0 %v1368_v5  ;;  %v1377_v14 = vld [vmem:[#allocation5 + $0xd8] sm:$0xff]   ;;  %v1381_v18 = vld [vmem:[#allocation5 + $0xe0] sm:$0xff]   ;;  %v1384_v21 = vld [vmem:[#allocation5 + $0x28] sm:$0xff]   ;;  %p1513_p8 = scmp.lt.s32.totalorder %s1833_s30, %s1511_s6 }
  0x73   : > { %1186 = vmatprep.subr.bf16.mxu0 %v1371_v8  ;;  %v1378_v15 = vld [vmem:[#allocation5 + $0x98] sm:$0xff]   ;;  %v1382_v19 = vld [vmem:[#allocation5 + $0xa0] sm:$0xff]   ;;  %v1385_v22 = vld [vmem:[#allocation5 + $0xe8] sm:$0xff]   ;;  %p1508_p2 = pnand %p1507_p1, %p1732_p4 }
  0x74   : > { %1207 = vmatpush3.bf16.msra.mxu1 %v1370_v7  ;;  %v1386_v23 = vld [vmem:[#allocation5 + $0xa8] sm:$0xff]   ;;  %v1387_v24 = vld [vmem:[#allocation5 + $0x70] sm:$0xff]   ;;  %v1391_v28 = vld [vmem:[#allocation5 + $0x78] sm:$0xff]  }
  0x75   : > { %1208 = vmatprep.subr.bf16.mxu1 %v1373_v10  ;;  %v1388_v25 = vld [vmem:[#allocation5 + $0x30] sm:$0xff]   ;;  %v1392_v29 = vld [vmem:[#allocation5 + $0x38] sm:$0xff]   ;;  %v1395_v38 = vld [vmem:[#allocation5 + $0x140] sm:$0xff]   ;;  %p1509_p6 = pneg %p1508_p2 }
  0x76   : > { %1187 = vmatpush3.bf16.msra.mxu0 %v1372_v9  ;;  %v1389_v26 = vld [vmem:[#allocation5 + $0xf0] sm:$0xff]   ;;  %v1393_v30 = vld [vmem:[#allocation5 + $0xf8] sm:$0xff]   ;;  %v1396_v42 = vld [vmem:[#allocation5 + $0x100] sm:$0xff]  }
  0x77   : > { %1188 = vmatprep.subr.bf16.mxu0 %v1375_v12  ;;  %v1390_v27 = vld [vmem:[#allocation5 + $0xb0] sm:$0xff]   ;;  %v277_v31 = vld [vmem:[%s1788_s16 + $0x8] sm:$0xff]  ;;  %v283_v36 = vld [vmem:[%s1788_s16 + $0x38] sm:$0xff] }
  0x78   : > { %1209 = vmatpush3.bf16.msra.mxu1 %v1374_v11  ;;  %v284_v32 = vld [vmem:[%s1788_s16 + $0x40] sm:$0xff]  ;;  %v1394_v34 = vld [vmem:[#allocation5 + $0xb8] sm:$0xff]   ;;  %v286_v40 = vld [vmem:[%s1788_s16 + $0x50] sm:$0xff] }
  0x79   : > { %1210 = vmatprep.subr.bf16.mxu1 %v1377_v14  ;;  %v291_v33 = vpack.c.bf16 %v284_v32, %v277_v31  ;;  %v276_v35 = vld [vmem:[%s1788_s16] sm:$0xff]  ;;  %v279_v39 = vld [vmem:[%s1788_s16 + $0x18] sm:$0xff]  ;;  %v278_v44 = vld [vmem:[%s1788_s16 + $0x10] sm:$0xff] }
  0x7a   : > { %1189 = vmatpush3.bf16.msra.mxu0 %v1376_v13  ;;  %v290_v37 = vpack.c.bf16 %v283_v36, %v276_v35  ;;  %v293_v41 = vpack.c.bf16 %v286_v40, %v279_v39  ;;  %v285_v45 = vld [vmem:[%s1788_s16 + $0x48] sm:$0xff]  ;;  %v1399_v49 = vld [vmem:[#allocation5 + $0x150] sm:$0xff]   ;;  %v1403_v53 = vld [vmem:[#allocation5 + $0x160] sm:$0xff]  }
  0x7b   : > { %1190 = vmatprep.subr.bf16.mxu0 %v1379_v16  ;;  %732 = vmatprep.mubr.bf16.mxu0 %v291_v33  ;;  %v292_v46 = vpack.c.bf16 %v285_v45, %v278_v44  ;;  %v1397_v47 = vld [vmem:[#allocation5 + $0x148] sm:$0xff]   ;;  %v1400_v50 = vld [vmem:[#allocation5 + $0x110] sm:$0xff]   ;;  %v1401_v51 = vld [vmem:[#allocation5 + $0x158] sm:$0xff]  }
  0x7c   : > { %1211 = vmatpush3.bf16.msra.mxu1 %v1378_v15  ;;  %773 = vmatprep.mubr.bf16.mxu1 %v293_v41  ;;  %v1398_v48 = vld [vmem:[#allocation5 + $0x108] sm:$0xff]   ;;  %v1402_v52 = vld [vmem:[#allocation5 + $0x118] sm:$0xff]   ;;  %v1404_v54 = vld [vmem:[#allocation5 + $0x120] sm:$0xff]  }
  0x7d   : > { %1212 = vmatprep.subr.bf16.mxu1 %v1381_v18  ;;  %v1405_v55 = vld [vmem:[#allocation5 + $0x168] sm:$0xff]   ;;  %v1411_v56 = vld [vmem:[#allocation5 + $0x180] sm:$0xff]   ;;  %v1407_v59 = vld [vmem:[#allocation5 + $0x170] sm:$0xff]  }
  0x7e   : > { %1191 = vmatpush3.bf16.msra.mxu0 %v1380_v17  ;;  %v281_v57 = vld [vmem:[%s1788_s16 + $0x28] sm:$0xff]  ;;  %v288_v60 = vld [vmem:[%s1788_s16 + $0x60] sm:$0xff]  ;;  %v282_v62 = vld [vmem:[%s1788_s16 + $0x30] sm:$0xff] }
  0x7f   : > { %1192 = vmatprep.subr.bf16.mxu0 %v1383_v20  ;;  %v1406_v58 = vld [vmem:[#allocation5 + $0x128] sm:$0xff]   ;;  %v295_v61 = vpack.c.bf16 %v288_v60, %v281_v57  ;;  %v1408_v1 = vld [vmem:[#allocation5 + $0x130] sm:$0xff]   ;;  %v1409_v2 = vld [vmem:[#allocation5 + $0x178] sm:$0xff]  }
  0x80   : > { %1213 = vmatpush3.bf16.msra.mxu1 %v1382_v19  ;;  %v289_v63 = vld [vmem:[%s1788_s16 + $0x68] sm:$0xff]  ;;  %v280_v4 = vld [vmem:[%s1788_s16 + $0x20] sm:$0xff]  ;;  %v287_v5 = vld [vmem:[%s1788_s16 + $0x58] sm:$0xff]  ;;  %s1512_s16 = scalar_lea.vmem %s1511_s6, 256 }
  0x81   : > { %1214 = vmatprep.subr.bf16.mxu1 %v1385_v22  ;;  %v296_v0 = vpack.c.bf16 %v289_v63, %v282_v62  ;;  %v1410_v3 = vld [vmem:[#allocation5 + $0x138] sm:$0xff]   ;;  %v294_v6 = vpack.c.bf16 %v287_v5, %v280_v4  ;;  %v1412_v7 = vld [vmem:[#allocation7] sm:$0xff]   ;;  %v1413_v8 = vld [vmem:[#allocation7 + $0x8] sm:$0xff]   ;;  %p1514_p13 = scmp.lt.s32.totalorder %s1512_s16, %s1506_s17 }
  0x82   : > { %1193 = vmatpush3.bf16.msra.mxu0 %v1384_v21  ;;  %v1414_v9 = vld [vmem:[#allocation7 + $0x10] sm:$0xff]   ;;  %v1415_v10 = vld [vmem:[#allocation7 + $0x18] sm:$0xff]   ;;  %v1416_v11 = vld [vmem:[#allocation7 + $0x20] sm:$0xff]  }
  0x83   : > { %1194 = vmatprep.subr.bf16.mxu0 %v1387_v24  ;;  %v1417_v12 = vld [vmem:[#allocation7 + $0x28] sm:$0xff]   ;;  %v1418_v13 = vld [vmem:[#allocation7 + $0x30] sm:$0xff]   ;;  %v1419_v14 = vld [vmem:[#allocation7 + $0x38] sm:$0xff]   ;;  %p1515_p3 = por %p1514_p13, %p1513_p8 }
  0x84   : > { %1215 = vmatpush3.bf16.msra.mxu1 %v1386_v23  ;;  %v1107_v16 = vld [vmem:[%s1883_s2] ss:$0 sm:$0xff] }
  0x85   : > { %1216 = vmatprep.subr.bf16.mxu1 %v1389_v26  ;;  %p1516_p7 = pnand %p1515_p3, %p1509_p6 }
  0x86   : > { %1195 = vmatpush3.bf16.msra.mxu0 %v1388_v25 }
  0x87   : > { %1196 = vmatprep.subr.bf16.mxu0 %v1391_v28 }
  0x88   : > { %1217 = vmatpush3.bf16.msra.mxu1 %v1390_v27 }
  0x89   : > { %1218 = vmatprep.subr.bf16.mxu1 %v1393_v30 }
  0x8a   : > { %1197 = vmatpush3.bf16.msra.mxu0 %v1392_v29 }
  0x8b   : > { %1226 = vmatprep.subr.bf16.mxu0 %v1395_v38 }
  0x8c   : > { %1219 = vmatpush3.bf16.msra.mxu1 %v1394_v34 }
  0x8d   : > { %1259 = vmatprep.subr.bf16.mxu1 %v1585_v43  ;;  %733 = vmatmul.mubr.bf16.vlgmr.msra.gmra.mrb[0].mxu0 %v290_v37 }
  0x8e   : > { %1227 = vmatpush3.bf16.msra.mxu0 %v1396_v42  ;;  %814 = vmatprep.mubr.bf16.mxu0 %v295_v61 }
  0x8f   : > { %774 = vmatmul.mubr.bf16.vlgmr.msra.gmra.mrb[0].mxu1 %v292_v46  ;;  %1228 = vmatprep.subr.bf16.mxu0 %v1397_v47 }
  0x90   : > { %1261 = vmatprep.mubr.msk.bf16.mxu1 %vm1586_vm0, %v1585_v43  ;;  %1260 = vmatpush3.bf16.msra.mxu1 %v1411_v56 }
  0x91   : > { %1265 = vmatprep.subr.bf16.mxu1 %v1585_v43 }
  0x92   : > { %1229 = vmatpush3.bf16.msra.mxu0 %v1398_v48 }
  0x93   : > { %1230 = vmatprep.subr.bf16.mxu0 %v1399_v49  ;;  %v1158_v49 = vld [vmem:[%s1885_s4] ss:$0 sm:$0xff] }
  0x96   : > { %1231 = vmatpush3.bf16.msra.mxu0 %v1400_v50 }
  0x97   : > { %1232 = vmatprep.subr.bf16.mxu0 %v1401_v51  ;;  %1262 = vmatmul.mubr.msk.bf16.vlgmr.msra.gmra.mrb[4].mxu1 %vm696_vm1, %v296_v0 }
  0x98   : > { %1281 = vmatprep.mubr.msk.bf16.mxu1 %vm1586_vm0, %v1585_v43  ;;  %1266 = vmatpush3.bf16.msra.mxu1 %v1412_v7 }
  0x99   : > { %1267 = vmatprep.subr.bf16.mxu1 %v1585_v43 }
  0x9a   : > { %1233 = vmatpush3.bf16.msra.mxu0 %v1402_v52 }
  0x9b   : > { %1234 = vmatprep.subr.bf16.mxu0 %v1403_v53 }
  0x9c   : > { %1268 = vmatpush3.bf16.msra.mxu1 %v1413_v8 }
  0x9d   : > { %1269 = vmatprep.subr.bf16.mxu1 %v1585_v43 }
  0x9e   : > { %1235 = vmatpush3.bf16.msra.mxu0 %v1404_v54 }
  0x9f   : > { %1236 = vmatprep.subr.bf16.mxu0 %v1405_v55 }
  0xa0   : > { %1270 = vmatpush3.bf16.msra.mxu1 %v1414_v9 }
  0xa1   : > { %1271 = vmatprep.subr.bf16.mxu1 %v1585_v43 }
  0xa2   : > { %1237 = vmatpush3.bf16.msra.mxu0 %v1406_v58 }
  0xa3   : > { %1238 = vmatprep.subr.bf16.mxu0 %v1407_v59 }
  0xa4   : > { %1272 = vmatpush3.bf16.msra.mxu1 %v1415_v10 }
  0xa5   : > { %1273 = vmatprep.subr.bf16.mxu1 %v1585_v43 }
  0xa6   : > { %1239 = vmatpush3.bf16.msra.mxu0 %v1408_v1 }
  0xa7   : > { %1240 = vmatprep.subr.bf16.mxu0 %v1409_v2 }
  0xa8   : > { %1274 = vmatpush3.bf16.msra.mxu1 %v1416_v11 }
  0xa9   : > { %1275 = vmatprep.subr.bf16.mxu1 %v1585_v43 }
  0xaa   : > { %1241 = vmatpush3.bf16.msra.mxu0 %v1410_v3 }
  0xac   : > { %1276 = vmatpush3.bf16.msra.mxu1 %v1417_v12 }
  0xad   : > { %815 = vmatmul.mubr.bf16.vlgmr.msra.gmra.mrb[4].mxu0 %v294_v6  ;;  %1277 = vmatprep.subr.bf16.mxu1 %v1585_v43 }
  0xb0   : > { %1278 = vmatpush3.bf16.msra.mxu1 %v1418_v13 }
  0xb1   : > { %1279 = vmatprep.subr.bf16.mxu1 %v1585_v43 }
  0xb4   : > { %1280 = vmatpush3.bf16.msra.mxu1 %v1419_v14 }
 0x160   : > { %v1198_v15 = vpop.f32.mrb[0].mxu0 }
 0x161   : > { %v1199_v17 = vpop.f32.mrb[1].mxu0 }
 0x162   : > { %v1200_v18 = vadd.f32 %v1199_v17, %v1198_v15  ;;  %v1201_v19 = vpop.f32.mrb[2].mxu0  ;;  %v1220_v20 = vpop.f32.mrb[0].mxu1 }
 0x163   : > { %v1202_v21 = vpop.f32.mrb[3].mxu0  ;;  %v1221_v24 = vpop.f32.mrb[1].mxu1 }
 0x164   : > { %v735_v22 = vadd.f32 %v1200_v18, %v1107_v16  ;;  %v1203_v23 = vadd.f32 %v1202_v21, %v1201_v19  ;;  %v1222_v25 = vadd.f32 %v1221_v24, %v1220_v20  ;;  %v1223_v26 = vpop.f32.mrb[2].mxu1 }
 0x165   : > { %v1224_v28 = vpop.f32.mrb[3].mxu1 }
 0x166   : > { %v738_v27 = vadd.f32 %v1203_v23, %v1107_v16  ;;  %v776_v29 = vadd.f32 %v1222_v25, %v735_v22  ;;  %v1225_v30 = vadd.f32 %v1224_v28, %v1223_v26 }
 0x168   : > { %v779_v31 = vadd.f32 %v1225_v30, %v738_v27 }
 0x16a   : > { %v857_v32 = vpop.f32.mrb[4].mxu1 }
 0x16b   : > { %v1263_v33 = vpop.f32.mrb[5].mxu1 }
 0x16c   : > { %v860_v34 = vpop.f32.mrb[6].mxu1 }
 0x16d   : > { %v1264_v35 = vpop.f32.mrb[7].mxu1 }
 0x180   : > { %v1242_v36 = vpop.f32.mrb[4].mxu0 }
 0x181   : > { %v1243_v37 = vpop.f32.mrb[5].mxu0 }
 0x182   : > { %v1244_v38 = vadd.f32 %v1243_v37, %v1242_v36  ;;  %v1245_v39 = vpop.f32.mrb[6].mxu0 }
 0x183   : > { %v1246_v40 = vpop.f32.mrb[7].mxu0 }
 0x184   : > { %v817_v41 = vadd.f32 %v1244_v38, %v776_v29  ;;  %v1247_v42 = vadd.f32 %v1246_v40, %v1245_v39 }
 0x186   : > { %v858_v43 = vadd.f32 %v857_v32, %v817_v41  ;;  %v820_v44 = vadd.f32 %v1247_v42, %v779_v31 }
 0x188   : > { %v861_v45 = vadd.f32 %v860_v34, %v820_v44  ;;  %v864_v46 = vmax.f32 %v858_v43, 0.0 }
 0x18a   : > { %v865_v47 = vmax.f32 %v861_v45, 0.0 }
 0x18c   : > { %v866_v48 = vpack.c.bf16 %v865_v47, %v864_v46 }
 0x18e   : > { %1282 = vmatmul.mubr.bf16.vlgmr.msra.gmra.mrb[8].mxu1 %v866_v48 }
 0x261   : > { %v972_v50 = vpop.f32.mrb[8].mxu1 }
 0x262   : > { %v1283_v51 = vpop.f32.mrb[9].mxu1  ;;  %v973_v53 = vadd.f32 %v1158_v49, %v972_v50 }
 0x263   : > { %v975_v52 = vpop.f32.mrb[10].mxu1 }
 0x264   : > { %v976_v54 = vadd.f32 %v1158_v49, %v975_v52  ;;  %v1284_v55 = vpop.f32.mrb[11].mxu1 }
 0x266   : > { %v1180_v56 = vpack.c.bf16 %v976_v54, %v973_v53 }
 0x268   : > { %1181 = vst [vmem:[%s272_s28] sm:$0xff] %v1180_v56  }
 0x269   : > { %1519 = shalt.err (!%p1516_p7)
}
 0x26a   : > { %s1520_s24 = scalar_lea.hbm %s1838_s12, 128  ;;  %s1524_s9 = scalar_lea.hbm %s1886_s5, 512 }
 0x26b   : > { %p1521_p9 = scmp.ne.s32.totalorder %s1838_s12, %s1520_s24  ;;  %p1525_p5 = scmp.lt.u32.totalorder %s1838_s12, %s1886_s5 }
 0x26c   : > { %p1526_p10 = scmp.lt.u32.totalorder %s1524_s9, %s1520_s24  ;;  %p1528_p1 = scmp.lt.u32.totalorder %s1520_s24, %s1838_s12 }
 0x26d   : > { %p1522_p12 = pnand %p1521_p9, %p1732_p4 }
 0x26e   : > { %p1527_p11 = por %p1526_p10, %p1525_p5 }
 0x26f   : > { %p1523_p0 = pneg %p1522_p12 }
 0x270   : > { %p1529_p2 = por %p1528_p1, %p1527_p11 }
 0x272   : > { %p1530_p6 = pnand %p1529_p2, %p1523_p0 }
 0x274   : > { %1533 = shalt.err (!%p1530_p6)
}
 0x275   : > { %s1588_s7 = smov 64   ;;  %s1589_s8 = smov 4  }
 0x276   : > { %1298 = dma.vmem_to_hbm [thread:$0]  (%p1732_p4), %s1833_s30, 128, %s1838_s12, %s990_s13, %s1588_s7, %s1588_s7, %s1589_s8  }
 0x277 PF: > { %p1320_p8 = scmp.ge.s32.totalorder %s1576_s21, 2  ;;  %s1018_s10 = sand.u32 1, %s1564_s18  }
 0x278   : > { %p1901_p13 = scmp.ne.s32.totalorder %s1891_s25, 0  ;;  %s1019_s17 = scalar_lea.sflag [#allocation4], %s1018_s10 }
 0x27a   : > { %p1312_p3 = pnand %p1320_p8, %p1901_p13 }
 0x27c   : > { %1559 = dma.done.wait (!%p1312_p3), %s1019_s17, 128  }
 0x27d   : > { %1561 = vsyncadd (!%p1312_p3), %s1019_s17, 4294967168  ;;  %p19_p7 = scmp.ge.s32.totalorder %s1722_s14, 6   ;;  %s1902_s18 = smov %s1568_s19 }
 0x27e   : > { %s1903_s19 = smov %s1572_s20  ;;  %s1904_s20 = smov %s1738_s27 }
 0x27f   : > { %s1905_s21 = smov %s1722_s14  ;;  %21 = sbr.rel (!%p19_p7) target bundleno = 6 (0x6), region = 93 }
 0x286   :  { %1024 = vsyncpa [#allocation3], 1 }
 0x287   :  { %1026 = vsyncpa [#allocation3 + $0x1], 1 }
 0x288   :  { %1027 = vsyncpa [#allocation6], 1 }
 0x289   :  { %1028 = vsyncpa [#allocation4], 1 }
 0x28a   :  { %1030 = vsyncpa [#allocation4 + $0x1], 1 }

</bundles_post_ra>
